<compile_context>
chip_gen: v7x
topology: tpu7x:2x2x1
jax: 0.10.0
libtpu: 0.0.40
codegen_flags: <defaults>
</compile_context>

<pallas_src>
import functools

import jax
import jax.numpy as jnp
from jax import lax
from jax.experimental import pallas as pl
from jax.experimental.pallas import tpu as pltpu


# --------------------------------------------------------------------------
# Kernels (all emit exp(-sqrt(sum_o d_o^2)) lane-dense as a (1, bb) row).
# Padded rows of a ragged last tile only pollute their own (discarded) lanes.
# --------------------------------------------------------------------------

def _reduce_to_row(sq_terms):
    """MXU reduction over the last axis, landing batch on the lane axis."""
    # jnp.ones here lowers to an immediate splat; a VMEM scratch initialized
    # under program_id==0 would be unsafe with megacore "parallel" sharding.
    ones = jnp.ones((1, sq_terms.shape[1]), jnp.float32)
    return lax.dot_general(ones, sq_terms, (((1,), (1,)), ((), ())),
                           preferred_element_type=jnp.float32)       # (1, bb)


def _diff_f32(x1_ref, x2_ref):
    # Subtract in f32 (works on v5e's f32-only VPU as well); caller downcasts
    # to the streamed dtype right before the MXU when streaming bf16.
    return x1_ref[...].astype(jnp.float32) - x2_ref[...].astype(jnp.float32)


def _fold_kernel(x1_ref, x2_ref, w_ref, out_ref):
    """d = dx @ W (E,O); out = exp(-||d||)."""
    dx32 = _diff_f32(x1_ref, x2_ref)
    d = jnp.dot(dx32.astype(w_ref.dtype), w_ref[...],
                preferred_element_type=jnp.float32)                  # (bb, O) MXU
    sq = _reduce_to_row(d * d)                                       # (1, bb)
    out_ref[...] = jnp.exp(-jnp.sqrt(sq))                            # lane-dense


def _gram_kernel(x1_ref, x2_ref, g_ref, out_ref):
    """||dx @ W||^2 == dx G dx^T with G = W W^T (E,E); cheaper when O > E."""
    dx32 = _diff_f32(x1_ref, x2_ref)
    t = jnp.dot(dx32.astype(g_ref.dtype), g_ref[...],
                preferred_element_type=jnp.float32)                  # (bb, E) MXU
    sq = _reduce_to_row(t * dx32)                                    # (1, bb)
    sq = jnp.maximum(sq, 0.0)  # PSD quadratic form; guard rounding below 0
    out_ref[...] = jnp.exp(-jnp.sqrt(sq))


def _unfused_kernel(x1_ref, x2_ref, w1t_ref, w2t_ref, out_ref):
    """Two chained matmuls; cheaper when H << min(E, O) and E*O is huge."""
    dx32 = _diff_f32(x1_ref, x2_ref)
    h = jnp.dot(dx32.astype(w1t_ref.dtype), w1t_ref[...],
                preferred_element_type=jnp.float32)                  # (bb, H)
    d = jnp.dot(h.astype(w2t_ref.dtype), w2t_ref[...],
                preferred_element_type=jnp.float32)                  # (bb, O)
    sq = _reduce_to_row(d * d)
    out_ref[...] = jnp.exp(-jnp.sqrt(sq))


_KERNELS = {"fold": _fold_kernel, "gram": _gram_kernel, "unfused": _unfused_kernel}


# --------------------------------------------------------------------------
# Planning: fold mode, batch tile, VMEM budget (static, per shape + chip).
# --------------------------------------------------------------------------

def _round_up(x, m):
    return ((x + m - 1) // m) * m


def _vmem_capacity_bytes():
    try:
        return int(pltpu.get_tpu_info().vmem_capacity_bytes)
    except Exception:
        return 64 * 1024 * 1024  # conservative (v7x-sized) fallback


def _resident_weight_spec(shape):
    """Grid-invariant weight: single-buffer it (saves its VMEM duplicate)."""
    index_map = lambda i: (0,) * len(shape)
    try:
        return pl.BlockSpec(shape, index_map,
                            pipeline_mode=pl.Buffered(buffer_count=1))
    except (TypeError, AttributeError):
        # Older jax without pipeline_mode: fall back to default buffering.
        return pl.BlockSpec(shape, index_map)


def _plan(B, E, H, O, stream_dtype, mode=None):
    isz = jnp.dtype(stream_dtype).itemsize

    # Per-tile MXU FLOP proxy and resident weight bytes per formulation.
    flops = {"fold": E * O, "gram": E * E + E, "unfused": H * (E + O)}
    wbytes = {"fold": E * O * isz, "gram": E * E * isz,
              "unfused": H * (E + O) * isz}

    vmem_cap = _vmem_capacity_bytes()
    # <= ~48 MiB on v7x (64 MiB physical), <= 64 MiB on v5e/v6e (128 MiB).
    vmem_budget = min((vmem_cap * 3) // 4, 64 << 20)

    if mode is None:
        weight_cap = vmem_budget // 2
        feasible = [m for m in flops if wbytes[m] <= weight_cap]
        if feasible:
            mode = min(feasible, key=lambda m: (flops[m], wbytes[m]))
        else:
            mode = min(flops, key=lambda m: wbytes[m])

    # Batch tile: ~4 MiB of x1+x2 per grid step (2-4 MiB band hides the
    # ~0.35us per-step overhead at 0.8-3.2 TB/s HBM), 128-aligned.
    target_step_bytes = 4 << 20
    bb = max(128, (target_step_bytes // (2 * E * isz)) // 128 * 128)
    bb = min(bb, _round_up(B, 128))
    if B >= 256:
        # Guarantee >= 2 parallel tiles so v7x's 2nd TensorCore isn't idle.
        bb = min(bb, _round_up((B + 1) // 2, 128))

    def est(bb_):
        tmp = bb_ * max(E, H, O) * 4                 # in-kernel f32 temporaries
        return (2 * 2 * bb_ * E * isz                # x1,x2 double-buffered
                + wbytes[mode]                       # single-buffered weight(s)
                + 2 * bb_ * 4                        # output row (double-buf)
                + tmp + (2 << 20))                   # margin / internal scratch

    while bb > 128 and est(bb) > vmem_budget:
        bb -= 128

    num_tiles = int(pl.cdiv(B, bb))
    if num_tiles == 1:
        bb = B  # block == full array dims -> legal without (8,128) alignment

    vmem_limit = int(max(vmem_budget, est(bb)))
    return mode, bb, num_tiles, vmem_limit


# --------------------------------------------------------------------------
# pallas_call wrapper
# --------------------------------------------------------------------------

@functools.partial(
    jax.jit,
    static_argnames=("mode", "bb", "num_tiles", "vmem_limit", "stream_dtype"))
def _mlpdist_impl(x1, x2, w1, w2, *, mode, bb, num_tiles, vmem_limit,
                  stream_dtype):
    B, E = x1.shape
    H = w1.shape[0]
    O = w2.shape[0]
    out_cols = num_tiles * bb

    x1s = x1.astype(stream_dtype)
    x2s = x2.astype(stream_dtype)

    if mode == "fold":
        w = (w1.T @ w2.T).astype(stream_dtype)            # (E, O), f32 fold
        weights = (w,)
        w_specs = [_resident_weight_spec((E, O))]
    elif mode == "gram":
        wf = w1.T @ w2.T                                  # (E, O) in f32
        g = (wf @ wf.T).astype(stream_dtype)              # (E, E)
        weights = (g,)
        w_specs = [_resident_weight_spec((E, E))]
    elif mode == "unfused":
        weights = (w1.T.astype(stream_dtype), w2.T.astype(stream_dtype))
        w_specs = [_resident_weight_spec((E, H)),
                   _resident_weight_spec((H, O))]
    else:
        raise ValueError(f"unknown mode {mode!r}")

    out = pl.pallas_call(
        _KERNELS[mode],
        out_shape=jax.ShapeDtypeStruct((1, out_cols), jnp.float32),
        grid_spec=pltpu.PrefetchScalarGridSpec(
            num_scalar_prefetch=0,
            grid=(num_tiles,),
            in_specs=[
                pl.BlockSpec((bb, E), lambda i: (i, 0)),   # x1 batch tile
                pl.BlockSpec((bb, E), lambda i: (i, 0)),   # x2 batch tile
                *w_specs,                                  # resident weight(s)
            ],
            out_specs=pl.BlockSpec((1, bb), lambda i: (0, i)),  # lane-dense
        ),
        compiler_params=pltpu.CompilerParams(
            dimension_semantics=("parallel",),
            vmem_limit_bytes=vmem_limit,
        ),
    )(x1s, x2s, *weights)

    return out[0, :B]


def mlpdist_forward(x1, x2, w1, b1, w2, b2, *, stream_dtype=jnp.float32,
                    mode=None):
    """exp(-||fc2(fc1(x1)) - fc2(fc1(x2))||_2) via a Pallas TPU kernel.

    x1, x2 : (B, E) float32
    w1     : (H, E) float32   (PyTorch fc1.weight layout)
    b1     : (H,)   float32   (cancels exactly in the difference; unused)
    w2     : (O, H) float32   (PyTorch fc2.weight layout)
    b2     : (O,)   float32   (cancels exactly in the difference; unused)
    stream_dtype : dtype used to stream x1/x2/W through HBM (f32 for exact
                   parity; bf16 halves streamed bytes, accumulation stays f32)
    mode   : None (auto) or one of "fold" / "gram" / "unfused"
    returns: (B,) float32
    """
    del b1, b2  # fc2(fc1(x1)) - fc2(fc1(x2)) is bias-free
    B, E = x1.shape
    H = w1.shape[0]
    O = w2.shape[0]
    mode, bb, num_tiles, vmem_limit = _plan(B, E, H, O, stream_dtype, mode)
    return _mlpdist_impl(x1, x2, w1, w2, mode=mode, bb=bb, num_tiles=num_tiles,
                         vmem_limit=vmem_limit, stream_dtype=stream_dtype)


def reference_forward(x1, x2, w1, b1, w2, b2):
    """Pure-JAX reference matching the PyTorch module (with biases)."""
    def mlp(x):
        return (x @ w1.T + b1) @ w2.T + b2
    d = mlp(x1) - mlp(x2)
    return jnp.exp(-jnp.linalg.norm(d, axis=1))


# --------------------------------------------------------------------------
# Self-test
# --------------------------------------------------------------------------

if __name__ == "__main__":
    def make_case(k, B, E, H, O):
        k1, k2, k3, k4, k5, k6 = jax.random.split(k, 6)
        x1 = jax.random.normal(k1, (B, E), jnp.float32)
        x2 = jax.random.normal(k2, (B, E), jnp.float32)
        l1 = 1.0 / (E ** 0.5)
        l2 = 1.0 / (H ** 0.5)
        w1 = jax.random.uniform(k3, (H, E), jnp.float32, -l1, l1)
        b1 = jax.random.uniform(k4, (H,), jnp.float32, -l1, l1)
        w2 = jax.random.uniform(k5, (O, H), jnp.float32, -l2, l2)
        b2 = jax.random.uniform(k6, (O,), jnp.float32, -l2, l2)
        return x1, x2, w1, b1, w2, b2

    # ((B, E, H, O), kwargs, atol, rtol)
    cases = [
        ((8, 32, 32, 16), dict(), 1e-5, 1e-5),                        # fold, 1 tile
        ((8, 32, 32, 16), dict(mode="unfused"), 1e-4, 1e-4),          # unfused path
        ((64, 32, 32, 64), dict(), 1e-4, 1e-4),                       # gram (O > E)
        ((300, 128, 64, 96), dict(), 1e-4, 1e-4),                     # 2 tiles, ragged
        ((64, 64, 32, 32),                                            # bf16 streaming
         dict(stream_dtype=jnp.bfloat16), 3e-2, 5e-2),                # loosened tol
    ]

    key = jax.random.PRNGKey(0)
    keys = jax.random.split(key, len(cases))
    for (shape, kwargs, atol, rtol), k in zip(cases, keys):
        B, E, H, O = shape
        x1, x2, w1, b1, w2, b2 = make_case(k, B, E, H, O)
        out = jax.block_until_ready(
            mlpdist_forward(x1, x2, w1, b1, w2, b2, **kwargs))
        ref = reference_forward(x1, x2, w1, b1, w2, b2)
        assert out.shape == (B,), (shape, out.shape)
        assert bool(jnp.allclose(out, ref, atol=atol, rtol=rtol)), (shape, kwargs)

    print("KERNEL_OK")
</pallas_src>

<mosaic_0001>
module attributes {stable_mosaic.version = 11 : i64} {
  func.func @_fold_kernel(%arg0: i32, %arg1: memref<8x32xf32, #tpu.memory_space<vmem>>, %arg2: memref<8x32xf32, #tpu.memory_space<vmem>>, %arg3: memref<32x16xf32, #tpu.memory_space<vmem>>, %arg4: memref<1x8xf32, #tpu.memory_space<vmem>>) attributes {dimension_semantics = [#tpu.dimension_semantics<parallel>], iteration_bounds = array<i64: 1>, scalar_prefetch = 0 : i64, scratch_operands = 0 : i64, tpu.core_type = #tpu.core_type<tc>, window_params = [{transform_indices = @transform_0, window_bounds = array<i64: 8, 32>}, {transform_indices = @transform_1, window_bounds = array<i64: 8, 32>}, {pipeline_mode = #tpu.pipeline_mode<synchronous>, transform_indices = @transform_2, window_bounds = array<i64: 32, 16>}, {transform_indices = @transform_3, window_bounds = array<i64: 1, 8>}]} {
    %c0 = arith.constant 0 : index
    %c0_0 = arith.constant 0 : index
    %0 = vector.load %arg1[%c0, %c0_0] : memref<8x32xf32, #tpu.memory_space<vmem>>, vector<8x32xf32>
    %c0_1 = arith.constant 0 : index
    %c0_2 = arith.constant 0 : index
    %1 = vector.load %arg2[%c0_1, %c0_2] : memref<8x32xf32, #tpu.memory_space<vmem>>, vector<8x32xf32>
    %2 = arith.subf %0, %1 : vector<8x32xf32>
    %c0_3 = arith.constant 0 : index
    %c0_4 = arith.constant 0 : index
    %3 = vector.load %arg3[%c0_3, %c0_4] : memref<32x16xf32, #tpu.memory_space<vmem>>, vector<32x16xf32>
    %cst = arith.constant dense<0.000000e+00> : vector<8x16xf32>
    %4 = tpu.matmul %2, %3, %cst {dimension_numbers = #tpu.dot_dimension_numbers<[1], [0], [0], [1], [0, 0, 1, 1], [], []>} : vector<8x32xf32>, vector<32x16xf32>, vector<8x16xf32> -> vector<8x16xf32>
    %5 = arith.mulf %4, %4 : vector<8x16xf32>
    %cst_5 = arith.constant 1.000000e+00 : f32
    %6 = vector.broadcast %cst_5 : f32 to vector<1x16xf32>
    %cst_6 = arith.constant dense<0.000000e+00> : vector<1x8xf32>
    %7 = tpu.matmul %6, %5, %cst_6 {dimension_numbers = #tpu.dot_dimension_numbers<[1], [1], [0], [0], [0, 0, 1, 0], [], []>} : vector<1x16xf32>, vector<8x16xf32>, vector<1x8xf32> -> vector<1x8xf32>
    %8 = math.sqrt %7 : vector<1x8xf32>
    %cst_7 = arith.constant 0.000000e+00 : f32
    %9 = vector.broadcast %cst_7 : f32 to vector<1x8xf32>
    %10 = arith.subf %9, %8 : vector<1x8xf32>
    %11 = math.exp %10 : vector<1x8xf32>
    %c0_8 = arith.constant 0 : index
    %c0_9 = arith.constant 0 : index
    %12 = vector.load %arg4[%c0_8, %c0_9] : memref<1x8xf32, #tpu.memory_space<vmem>>, vector<1x8xf32>
    tpu.vector_store %arg4[%c0_8, %c0_9], %11 {strides = array<i32>} : memref<1x8xf32, #tpu.memory_space<vmem>>, vector<1x8xf32>,
    return
  }
  func.func @transform_0(%arg0: i32) -> (i32, i32) {
    %c0_i32 = arith.constant 0 : i32
    %c0_i32_0 = arith.constant 0 : i32
    return %arg0, %c0_i32 : i32, i32
  }
  func.func @transform_1(%arg0: i32) -> (i32, i32) {
    %c0_i32 = arith.constant 0 : i32
    %c0_i32_0 = arith.constant 0 : i32
    return %arg0, %c0_i32 : i32, i32
  }
  func.func @transform_2(%arg0: i32) -> (i32, i32) {
    %c0_i32 = arith.constant 0 : i32
    %c0_i32_0 = arith.constant 0 : i32
    %c0_i32_1 = arith.constant 0 : i32
    return %c0_i32, %c0_i32_0 : i32, i32
  }
  func.func @transform_3(%arg0: i32) -> (i32, i32) {
    %c0_i32 = arith.constant 0 : i32
    %c0_i32_0 = arith.constant 0 : i32
    return %c0_i32, %arg0 : i32, i32
  }
}

</mosaic_0001>

<bundles_post_ra>
// kernel: _mlpdist_impl.1
= control target key start
LH: loop header
LB: loop body
LE: loop exit
PB: predicated region body
PF: predicated region fallthrough
CT: control target
= control target key end

     0   :  { %v265_v3 = vmov 0.0|0.0   ;;  %vm266_vm0 = vmmov 0   ;;  %v267_v6 = vmov 0.0   ;;  %s320_s0 = inlined_call_operand.vmem [shape: f32[8,32], index: 0, kind: input, shape index: {}]   ;;  %s321_s1 = inlined_call_operand.vmem [shape: f32[8,32], index: 1, kind: input, shape index: {}]   ;;  %s322_s2 = inlined_call_operand.vmem [shape: f32[32,16], index: 2, kind: input, shape index: {}]   ;;  %s323_s3 = inlined_call_operand.hbm [shape: f32[1,8], index: 3, kind: output, shape index: {}]  }
   0x1   :  { %v18_v0 = vld [vmem:[%s322_s2] sm:$0xff]  ;;  %v19_v1 = vld [vmem:[%s322_s2 + $0x8] sm:$0xff]  ;;  %v20_v2 = vld [vmem:[%s322_s2 + $0x10] sm:$0xff]  ;;  %226 = vmatprep.subr.bf16.mxu0 %v265_v3  ;;  %218 = vmatprep.mubr.msk.f32.mxu0 %vm266_vm0, %v267_v6 }
   0x2   :  { %v227_v4 = vpack.c.bf16 %v19_v1, %v18_v0  ;;  %v21_v5 = vld [vmem:[%s322_s2 + $0x18] sm:$0xff]  ;;  %221 = vmatprep.subr.mxu1 %v267_v6  ;;  %223 = vmatprep.mubr.msk.f32.mxu1 %vm266_vm0, %v267_v6 }
   0x3   :  { %8 = vsyncpa [#allocation3], 0  ;;  %v230_v7 = vpack.c.bf16 %v21_v5, %v20_v2  ;;  %v15_v8 = vld [vmem:[%s320_s0] sm:$0xff]  ;;  %vm22_vm1 = vcmask 261120   ;;  %vm97_vm2 = vcmask 130048   ;;  %v268_v14 = vmov 1.0  }
   0x4   :  { %228 = vmatpush3.bf16.msra.mxu0 %v227_v4  ;;  %v16_v9 = vld [vmem:[%s321_s1] sm:$0xff]  ;;  %s269_s0 = smov [#allocation2]   ;;  %vm184_vm5 = vcmask 57344  }
   0x5   :  { %229 = vmatprep.subr.bf16.mxu0 %v265_v3  ;;  %v17_v10 = vsub.f32 %v15_v8, %v16_v9  ;;  %s192_s1 = sshll.u32 %s269_s0, 4  ;;  %s193_s1 = int_to_ptr.vmem [resolvable:$true] %s192_s1 }
   0x6   :  { %s241_s2 = scalar_lea.vmem %s193_s1, 16  ;;  %s245_s24 = scalar_lea.vmem %s193_s1, 32 }
   0x7   :  { %p242_p0 = scmp.ne.s32.totalorder %s193_s1, %s241_s2  ;;  %p246_p1 = scmp.lt.s32.totalorder %s193_s1, %s193_s1 }
   0x8   :  { %231 = vmatpush3.bf16.msra.mxu0 %v230_v7  ;;  %p247_p2 = scmp.lt.s32.totalorder %s245_s24, %s241_s2 }
   0xa   :  { %p248_p3 = por %p247_p2, %p246_p1 }
   0xb   :  { %219 = vmatmul.mubr.msk.f32.vlgmr.msra.gmra.mrb[0].mxu0 %vm22_vm1, %v17_v10 }
   0xc   :  { %p249_p4 = pnand %p248_p3, %p242_p0 }
  0xde   :  { %v92_v11 = vpop.f32.mrb[0].mxu0 }
  0xdf   :  { %v96_v12 = vmul.f32 %v92_v11, %v92_v11  ;;  %v220_v13 = vpop.f32.mrb[1].mxu0 }
  0xe1   :  { %222 = vmatpush3.xpose.msk.msra.mxu1 %vm97_vm2, %v96_v12 }
  0xe4   :  { %224 = vmatmul.mubr.msk.f32.vlgmr.msra.gmra.mrb[0].mxu1 %vm97_vm2, %v268_v14 }
 0x1b7   :  { %v170_v15 = vpop.f32.mrb[0].mxu1 }
 0x1b8   :  { %237 = vrsqrt.f32 %v170_v15  ;;  %v225_v16 = vpop.f32.mrb[1].mxu1  ;;  %vm176_vm3 = vcmp.eq.f32.partialorder %v170_v15, inf  ;;  %v179_v19 = vand.u32 2147483648, %v170_v15  ;;  %vm178_vm4 = vcmp.eq.f32.partialorder %v170_v15, 0.0 }
 0x1c2   :  { %v238_v17 = vpop.eup %237 }
 0x1c3   :  { %v175_v18 = vmul.f32 %v238_v17, %v170_v15 }
 0x1c5   :  { %v177_v20 = vsel %vm176_vm3, %v170_v15, %v175_v18 }
 0x1c6   :  { %v180_v21 = vsel %vm178_vm4, %v179_v19, %v177_v20 }
 0x1c7   :  { %v181_v22 = vsub.f32 0.0, %v180_v21 }
 0x1c9   :  { %v182_v23 = vmul.f32 1.442695, %v181_v22 }
 0x1cb   :  { %239 = vpow2.f32 %v182_v23 }
 0x1d5   :  { %v240_v24 = vpop.eup %239 }
 0x1d6   :  { %185 = vst.msk [vmem:[#allocation2] sm:$0x1] %vm184_vm5, %v240_v24 }
 0x1d7   :  { %252 = shalt.err (!%p249_p4)
}
 0x1d8   :  { %s253_s27 = scalar_lea.hbm %s323_s3, 16 }
 0x1d9   :  { %p254_p5 = scmp.ne.s32.totalorder %s323_s3, %s253_s27  ;;  %p257_p6 = scmp.lt.u32.totalorder %s253_s27, %s323_s3 }
 0x1db   :  { %p259_p7 = pnand %p257_p6, %p254_p5 }
 0x1dd   :  { %262 = shalt.err (!%p259_p7)
}
 0x1de   :  { %195 = dma.vmem_to_hbm [thread:$0]  %s193_s1, 16, %s323_s3, [#allocation3]  }
 0x1df   :  { %263 = dma.done.wait [#allocation3], 16  }
 0x1e0   :  { %264 = vsyncadd [#allocation3], 4294967280 }
 0x1e1   :  { %199 = vsyncpa [#allocation3], 1 }

</bundles_post_ra>
